<compile_context>
chip_gen: v5e
topology: v5e:2x2
jax: 0.10.0
libtpu: 0.0.40
codegen_flags: <defaults>
</compile_context>

<pallas_src>
import jax
import jax.numpy as jnp
from jax.experimental import pallas as pl
from jax.experimental.pallas import tpu as pltpu


def _round_up(x, m):
    return (x + m - 1) // m * m


def _pick_tile(dim, unit, max_tile):
    """Largest multiple of `unit` that divides `dim` and is <= max_tile.

    `dim` is already a multiple of `unit`, so `unit` always qualifies.  Picking
    a divisor means no padding beyond `unit` alignment is ever materialized.
    """
    best = unit
    t = unit
    limit = min(dim, max_tile)
    while t <= limit:
        if dim % t == 0:
            best = t
        t += unit
    return best


def _linear_repeat_small_kernel(x_ref, w_ref, b_ref, o_ref):
    # Whole problem in a single VMEM block: (m, k) @ (k, n) + (1, n).
    o_ref[...] = (
        jnp.dot(x_ref[...], w_ref[...], preferred_element_type=jnp.float32)
        + b_ref[...]
    ).astype(o_ref.dtype)


def _linear_repeat_kernel(x_ref, w_ref, b_ref, o_ref, acc_ref):
    # x_ref: (tm, tk)   w_ref: (tk, tn)   b_ref: (1, tn) f32
    # o_ref: (tm, tn)   acc_ref: (tm, tn) f32 scratch
    k = pl.program_id(2)

    @pl.when(k == 0)
    def _():
        # Seed the accumulator with the broadcast bias: removes the f32 add
        # (and an extra bias vreg load) from the last-K-step epilogue.
        acc_ref[...] = jnp.broadcast_to(b_ref[...], acc_ref.shape)

    # Plain NN matmul — weight was pre-transposed to (K, N) in the wrapper, so
    # the MXU contracts the sublane dim of the RHS with no per-tile relayout.
    acc_ref[...] += jnp.dot(x_ref[...], w_ref[...],
                            preferred_element_type=jnp.float32)

    @pl.when(k == pl.num_programs(2) - 1)
    def _():
        o_ref[...] = acc_ref[...].astype(o_ref.dtype)


def linear_repeat(x, weight, bias, repeats, out_features, *,
                  tm=512, tn=512, tk=1024, compute_dtype=None):
    """x: (..., in_features); weight: (repeats*out_features, in_features);
    bias: (repeats*out_features,). Returns (..., repeats, out_features).

    compute_dtype: optionally cast x / weight (e.g. jnp.bfloat16) before the
    matmul; accumulation and bias add always happen in float32.
    """
    in_features = x.shape[-1]
    n = repeats * out_features
    assert weight.shape == (n, in_features)
    assert bias.shape == (n,)

    lead = x.shape[:-1]
    m = 1
    for d in lead:
        m *= d
    out_dtype = x.dtype

    # Degenerate leading dims -> empty result, no kernel launch.
    if m == 0:
        return jnp.zeros((*lead, repeats, out_features), dtype=out_dtype)

    cdt = jnp.dtype(compute_dtype) if compute_dtype is not None else jnp.dtype(x.dtype)
    # dtype-aware sublane packing: 8 rows (4-byte), 16 (2-byte), 32 (1-byte).
    sub = {4: 8, 2: 16, 1: 32}.get(cdt.itemsize, 8)

    x2 = x.reshape(m, in_features).astype(cdt)
    # One-time weight prep (transpose to MXU-native (K, N) + optional cast).
    # For repeated calls with constant weights this is hoisted by jit / the
    # caller; it is a single HBM pass amortized over all M tiles, unlike a
    # per-tile in-kernel transpose.
    wT = weight.astype(cdt).T                       # (K, N)
    b2 = bias.astype(jnp.float32).reshape(1, n)

    # ---------- small-problem fast path: one block, zero pad/slice ----------
    if m <= tm and n <= tn and in_features <= tk:
        y = pl.pallas_call(
            _linear_repeat_small_kernel,
            out_shape=jax.ShapeDtypeStruct((m, n), out_dtype),
        )(x2, wT, b2)
        return y.reshape(*lead, repeats, out_features)

    # ------------------------------ tiled path ------------------------------
    m_al = _round_up(m, sub)
    n_al = _round_up(n, 128)
    k_al = _round_up(in_features, 128)

    # Tiles divide the alignment-rounded dims -> padding is only ever the
    # minimal (sublane, 128) alignment, never up to a full tile.
    tm = _pick_tile(m_al, sub, tm)
    tn = _pick_tile(n_al, 128, tn)
    tk = _pick_tile(k_al, 128, tk)

    # v7x has 2 TensorCores: ensure at least one "parallel" axis has >= 2
    # tiles so a core does not idle (lane-dense N split, never below 128).
    if m_al // tm == 1 and n_al // tn == 1 and n_al >= 256:
        tn = _pick_tile(n_al, 128, n_al // 2)

    if (m_al, k_al) != (m, in_features):
        x2 = jnp.pad(x2, ((0, m_al - m), (0, k_al - in_features)))
    if (k_al, n_al) != (in_features, n):
        wT = jnp.pad(wT, ((0, k_al - in_features), (0, n_al - n)))
    if n_al != n:
        b2 = jnp.pad(b2, ((0, 0), (0, n_al - n)))

    grid = (m_al // tm, n_al // tn, k_al // tk)

    cost = pl.CostEstimate(
        flops=2 * m_al * n_al * k_al,
        transcendentals=0,
        bytes_accessed=(x2.size * x2.dtype.itemsize
                        + wT.size * wT.dtype.itemsize
                        + b2.size * b2.dtype.itemsize
                        + m_al * n_al * jnp.dtype(out_dtype).itemsize),
    )

    y = pl.pallas_call(
        _linear_repeat_kernel,
        out_shape=jax.ShapeDtypeStruct((m_al, n_al), out_dtype),
        grid_spec=pltpu.PrefetchScalarGridSpec(
            num_scalar_prefetch=0,
            grid=grid,
            in_specs=[
                pl.BlockSpec((tm, tk), lambda i, j, k: (i, k)),   # x    (M, K)
                pl.BlockSpec((tk, tn), lambda i, j, k: (k, j)),   # W^T  (K, N)
                pl.BlockSpec((1, tn), lambda i, j, k: (0, j)),    # bias (1, N)
            ],
            out_specs=pl.BlockSpec((tm, tn), lambda i, j, k: (i, j)),
            scratch_shapes=[pltpu.VMEM((tm, tn), jnp.float32)],
        ),
        compiler_params=pltpu.CompilerParams(
            dimension_semantics=("parallel", "parallel", "arbitrary"),
            vmem_limit_bytes=64 * 1024 * 1024,
        ),
        cost_estimate=cost,
    )(x2, wT, b2)

    if (m_al, n_al) != (m, n):
        y = y[:m, :n]
    # NOTE: trailing reshape to (..., repeats, out_features) is required by the
    # module spec; consumers wanting a lane-dense layout should keep (M, N).
    return y.reshape(*lead, repeats, out_features)


if __name__ == "__main__":
    key = jax.random.PRNGKey(0)

    # ---- test 1: tiny problem -> single-block fast path --------------------
    batch, seq = 2, 8
    in_features, out_features, repeats = 32, 16, 3
    k1, k2, k3, key = jax.random.split(key, 4)
    x = jax.random.normal(k1, (batch, seq, in_features), dtype=jnp.float32)
    bound = 1.0 / (in_features ** 0.5)
    weight = jax.random.uniform(k2, (repeats * out_features, in_features),
                                minval=-bound, maxval=bound, dtype=jnp.float32)
    bias = jax.random.uniform(k3, (repeats * out_features,),
                              minval=-bound, maxval=bound, dtype=jnp.float32)
    out = jax.block_until_ready(
        linear_repeat(x, weight, bias, repeats, out_features))
    ref = (x @ weight.T + bias).reshape(batch, seq, repeats, out_features)
    assert out.shape == ref.shape
    assert jnp.allclose(out, ref, atol=1e-5, rtol=1e-5)

    # ---- test 2: unaligned shapes -> tiled path (padding + K reduction) ----
    batch, seq = 2, 50
    in_features, out_features, repeats = 200, 40, 3
    k1, k2, k3, key = jax.random.split(key, 4)
    x = jax.random.normal(k1, (batch, seq, in_features), dtype=jnp.float32)
    bound = 1.0 / (in_features ** 0.5)
    weight = jax.random.uniform(k2, (repeats * out_features, in_features),
                                minval=-bound, maxval=bound, dtype=jnp.float32)
    bias = jax.random.uniform(k3, (repeats * out_features,),
                              minval=-bound, maxval=bound, dtype=jnp.float32)
    out = jax.block_until_ready(
        linear_repeat(x, weight, bias, repeats, out_features,
                      tm=128, tn=128, tk=128))
    ref = (jnp.einsum("bsk,nk->bsn", x, weight,
                      precision=jax.lax.Precision.HIGHEST) + bias
           ).reshape(batch, seq, repeats, out_features)
    assert out.shape == ref.shape
    assert jnp.allclose(out, ref, atol=1e-2, rtol=1e-2)

    print("KERNEL_OK")
</pallas_src>

<mosaic_0001>
module attributes {stable_mosaic.version = 11 : i64} {
  func.func @_linear_repeat_small_kernel(%arg0: memref<16x32xf32, #tpu.memory_space<vmem>>, %arg1: memref<32x48xf32, #tpu.memory_space<vmem>>, %arg2: memref<1x48xf32, #tpu.memory_space<vmem>>, %arg3: memref<16x48xf32, #tpu.memory_space<vmem>>) attributes {dimension_semantics = [], scalar_prefetch = 0 : i64, scratch_operands = 0 : i64, tpu.core_type = #tpu.core_type<tc>} {
    %c0 = arith.constant 0 : index
    %c0_0 = arith.constant 0 : index
    %0 = vector.load %arg0[%c0, %c0_0] : memref<16x32xf32, #tpu.memory_space<vmem>>, vector<16x32xf32>
    %c0_1 = arith.constant 0 : index
    %c0_2 = arith.constant 0 : index
    %1 = vector.load %arg1[%c0_1, %c0_2] : memref<32x48xf32, #tpu.memory_space<vmem>>, vector<32x48xf32>
    %cst = arith.constant dense<0.000000e+00> : vector<16x48xf32>
    %2 = tpu.matmul %0, %1, %cst {dimension_numbers = #tpu.dot_dimension_numbers<[1], [0], [0], [1], [0, 0, 1, 1], [], []>} : vector<16x32xf32>, vector<32x48xf32>, vector<16x48xf32> -> vector<16x48xf32>
    %c0_3 = arith.constant 0 : index
    %c0_4 = arith.constant 0 : index
    %3 = vector.load %arg2[%c0_3, %c0_4] : memref<1x48xf32, #tpu.memory_space<vmem>>, vector<1x48xf32>
    %4 = vector.broadcast %3 : vector<1x48xf32> to vector<16x48xf32>
    %5 = arith.addf %2, %4 : vector<16x48xf32>
    %c0_5 = arith.constant 0 : index
    %c0_6 = arith.constant 0 : index
    %6 = vector.load %arg3[%c0_5, %c0_6] : memref<16x48xf32, #tpu.memory_space<vmem>>, vector<16x48xf32>
    tpu.vector_store %arg3[%c0_5, %c0_6], %5 {strides = array<i32>} : memref<16x48xf32, #tpu.memory_space<vmem>>, vector<16x48xf32>,
    return
  }
}

</mosaic_0001>

<bundles_post_ra>
// kernel: tpu_custom_call.1
= control target key start
LH: loop header
LB: loop body
LE: loop exit
PB: predicated region body
PF: predicated region fallthrough
CT: control target
= control target key end

     0   :  { %8 = vsyncpa [#allocation3], 0  ;;  %s246_s0 = inlined_call_operand.hbm [shape: f32[16,32], index: 0, kind: input, shape index: {}]   ;;  %s247_s1 = inlined_call_operand.hbm [shape: f32[32,48], index: 1, kind: input, shape index: {}]   ;;  %s248_s2 = inlined_call_operand.vmem [shape: f32[1,48], index: 2, kind: input, shape index: {}]   ;;  %s249_s3 = inlined_call_operand.hbm [shape: f32[16,48], index: 3, kind: output, shape index: {}]  }
   0x1   :  { %9 = vsyncpa [#allocation6], 0 }
   0x2   :  { %10 = vsyncpa [#allocation4], 0  ;;  %s15_s14 = sshll.u32 %s246_s0, 4  ;;  %s200_s15 = smov [#allocation2]   ;;  %s16_s14 = int_to_ptr.hbm [resolvable:$true] %s15_s14 }
   0x3   :  { %s17_s16 = sshll.u32 %s200_s15, 4  ;;  %s28_s19 = sshll.u32 %s247_s1, 4  ;;  %s18_s16 = int_to_ptr.vmem [resolvable:$true] %s17_s16  ;;  %s29_s19 = int_to_ptr.hbm [resolvable:$true] %s28_s19 }
   0x4   :  { %s201_s20 = smov 128   ;;  %s202_s21 = smov 8  }
   0x5   :  { %23 = dma.hbm_to_vmem [thread:$0]  %s16_s14, 256, %s18_s16, [#allocation3], %s201_s20, %s201_s20, %s202_s21  }
   0x6   :  { %s203_s22 = smov [#allocation5]  }
   0x7   :  { %s30_s23 = sshll.u32 %s203_s22, 4  ;;  %s31_s23 = int_to_ptr.vmem [resolvable:$true] %s30_s23 }
   0x8   :  { %36 = dma.hbm_to_vmem [thread:$0]  %s29_s19, 512, %s31_s23, [#allocation6], %s201_s20, %s201_s20, %s202_s21  }
   0x9   :  { %194 = dma.done.wait [#allocation3], 256  }
   0xa   :  { %195 = vsyncadd [#allocation3], 4294967040 }
   0xb   :  { %196 = dma.done.wait [#allocation6], 512  }
   0xc   :  { %197 = vsyncadd [#allocation6], 4294966784  ;;  %v52_v0 = vld [vmem:[#allocation5 + $0x18] sm:$0xff]  ;;  %v51_v1 = vld [vmem:[#allocation5 + $0x10] sm:$0xff]  ;;  %vm57_vm0 = vcmask 261120   ;;  %s204_s24 = smov [#allocation7]  }
   0xd   :  { %76 = vmatpush.msra.mxu0 %v52_v0  ;;  %112 = vmatpush.msra.mxu1 %v52_v0  ;;  %v50_v2 = vld [vmem:[#allocation5 + $0x8] sm:$0xff]  ;;  %v49_v3 = vld [vmem:[#allocation5] sm:$0xff]  ;;  %v47_v4 = vld [vmem:[#allocation2] sm:$0xff]  ;;  %s94_s25 = sshll.u32 %s204_s24, 4  ;;  %s96_s28 = sshll.u32 %s249_s3, 4  ;;  %vm87_vm1 = vcmask 392192   ;;  %s95_s25 = int_to_ptr.vmem [resolvable:$true] %s94_s25  ;;  %s97_s28 = int_to_ptr.hbm [resolvable:$true] %s96_s28 }
   0xe   :  { %v48_v5 = vld [vmem:[#allocation2 + $0x8] sm:$0xff]  ;;  %v121_v6 = vld [vmem:[%s248_s2] ss:$0 sm:$0xff] }
   0xf   :  { %77 = vmatpush.msra.mxu0 %v51_v1  ;;  %113 = vmatpush.msra.mxu1 %v51_v1 }
  0x11   :  { %78 = vmatpush.msra.mxu0 %v50_v2  ;;  %114 = vmatpush.msra.mxu1 %v50_v2 }
  0x13   :  { %79 = vmatpush.msra.mxu0 %v49_v3  ;;  %115 = vmatpush.msra.mxu1 %v49_v3 }
  0x14   :  { %110 = vmatmul.msk.f32.vlgmr.msra.gmra.mxu0 %vm57_vm0, %v47_v4  ;;  %111 = vmatmul.msk.f32.vlgmr.msra.gmra.mxu1 %vm57_vm0, %v48_v5 }
  0x91   :  { %v81_v7 = vpop.f32.mrf.mxu0  ;;  %v84_v8 = vpop.f32.mrf.mxu1 }
  0x92   :  { %v82_v9 = vadd.f32 %v121_v6, %v81_v7  ;;  %v85_v10 = vadd.f32 %v121_v6, %v84_v8 }
  0x94   :  { %88 = vst.msk [vmem:[#allocation7] sm:$0xff] %vm87_vm1, %v82_v9 }
  0x95   :  { %89 = vst.msk [vmem:[#allocation7 + $0x8] sm:$0xff] %vm87_vm1, %v85_v10 }
  0x96   :  { %102 = dma.vmem_to_hbm [thread:$0]  %s95_s25, 256, %s97_s28, [#allocation4], %s201_s20, %s201_s20, %s202_s21  }
  0x97   :  { %198 = dma.done.wait [#allocation4], 256  }
  0x98   :  { %199 = vsyncadd [#allocation4], 4294967040 }
  0x99   :  { %107 = vsyncpa [#allocation3], 1 }
  0x9a   :  { %108 = vsyncpa [#allocation6], 1 }
  0x9b   :  { %109 = vsyncpa [#allocation4], 1 }

</bundles_post_ra>
